<compile_context>
chip_gen: v6e
topology: v6e:2x2x1
jax: 0.10.0
libtpu: 0.0.40
codegen_flags: <defaults>
</compile_context>

<pallas_src>
import jax
import jax.numpy as jnp
from jax.experimental import pallas as pl
from jax.experimental.pallas import tpu as pltpu

_LANE = 128
_SUBLANE = 8


def _round_up(x, m):
    return ((x + m - 1) // m) * m


def _mlp_kernel(*refs):
    """Fused MLP:  out = relu(...relu(relu(x@W1+b1)@W2+b2)...).

    refs = (x_ref, w1_ref, b1_ref, ..., wN_ref, bN_ref, out_ref)
    x/w refs hold bf16 (MXU-native inputs); biases are f32; accumulation,
    bias-add and ReLU stay in f32.
    """
    x_ref = refs[0]
    out_ref = refs[-1]
    param_refs = refs[1:-1]
    n_layers = len(param_refs) // 2
    assert n_layers >= 1

    h_bf16 = x_ref[...]                               # (row_tile, d_in_pad) bf16
    h_f32 = None
    for layer in range(n_layers):
        w = param_refs[2 * layer][...]                # (d_in_pad, d_out_pad) bf16
        b = param_refs[2 * layer + 1][...]            # (1, d_out_pad) f32
        acc = jnp.dot(h_bf16, w, preferred_element_type=jnp.float32)
        h_f32 = jnp.maximum(acc + b, 0.0)             # bias + ReLU in f32
        # Dropout(p) -> identity in eval mode.
        if layer + 1 < n_layers:
            h_bf16 = h_f32.astype(jnp.bfloat16)       # feed next MXU pass in bf16
    out_ref[...] = h_f32.astype(out_ref.dtype)


def mlp_forward(x, weights_t, biases, *, row_tile=256,
                vmem_cap_bytes=48 * 1024 * 1024):
    """Run the fused MLP kernel (inference semantics, use_bn=False).

    x:         (batch, num_fields, embed_dim) float32
    weights_t: list of (d_in, d_out) float32 arrays (transposed from torch (out, in))
    biases:    list of (d_out,) float32 arrays
    """
    batch, num_fields, embed_dim = x.shape
    rows = batch * num_fields
    n_layers = len(weights_t)
    assert n_layers >= 1
    out_dim = weights_t[-1].shape[1]

    # ---- lane-dense padding: every feature dim up to a multiple of 128 ----
    dims = [embed_dim] + [w.shape[1] for w in weights_t]
    dims_pad = [_round_up(d, _LANE) for d in dims]
    out_pad = dims_pad[-1]

    # ---- row tiling: pick the largest tile that fits the VMEM budget ----
    rt = _round_up(min(row_tile, _round_up(rows, _SUBLANE)), _SUBLANE)

    def resident_bytes(rt_):
        xb = 2 * rt_ * dims_pad[0] * 2                       # double-buffered bf16 x
        ob = 2 * rt_ * out_pad * 4                           # double-buffered f32 out
        wb = sum(di * do * 2 for di, do in zip(dims_pad[:-1], dims_pad[1:]))
        bb = sum(do * 4 for do in dims_pad[1:])
        hb = 2 * rt_ * max(dims_pad) * 4                     # live f32 intermediate
        return xb + ob + 2 * (wb + bb) + hb

    while rt > _SUBLANE and resident_bytes(rt) > vmem_cap_bytes:
        rt = _round_up(rt // 2, _SUBLANE)

    rows_pad = _round_up(rows, rt)
    grid = (rows_pad // rt,)

    # ---- prepare padded bf16 inputs / padded f32 biases ----
    x2 = x.reshape(rows, embed_dim).astype(jnp.bfloat16)
    x2 = jnp.pad(x2, ((0, rows_pad - rows), (0, dims_pad[0] - embed_dim)))

    args = [x2]
    in_specs = [pl.BlockSpec((rt, dims_pad[0]), lambda i: (i, 0))]
    for li, (w, b) in enumerate(zip(weights_t, biases)):
        di, do = w.shape
        dip, dop = dims_pad[li], dims_pad[li + 1]
        wp = jnp.pad(w, ((0, dip - di), (0, dop - do))).astype(jnp.bfloat16)
        bp = jnp.pad(b, (0, dop - do)).astype(jnp.float32).reshape(1, dop)
        args.append(wp)
        args.append(bp)
        # Grid-invariant index_map -> single DMA, tile stays resident.
        in_specs.append(pl.BlockSpec(wp.shape, lambda i: (0, 0)))
        in_specs.append(pl.BlockSpec(bp.shape, lambda i: (0, 0)))

    out_specs = pl.BlockSpec((rt, out_pad), lambda i: (i, 0))

    flops = 2 * rows_pad * sum(di * do for di, do in
                               zip(dims_pad[:-1], dims_pad[1:]))
    bytes_accessed = (rows_pad * dims_pad[0] * 2 + rows_pad * out_pad * 4
                      + sum(di * do * 2 for di, do in
                            zip(dims_pad[:-1], dims_pad[1:]))
                      + sum(do * 4 for do in dims_pad[1:]))
    cost = pl.CostEstimate(flops=flops, transcendentals=0,
                           bytes_accessed=bytes_accessed)

    vmem_limit = int(min(max(resident_bytes(rt) * 3 // 2, 8 << 20),
                         vmem_cap_bytes))

    out2 = pl.pallas_call(
        _mlp_kernel,
        out_shape=jax.ShapeDtypeStruct((rows_pad, out_pad), jnp.float32),
        grid=grid,
        in_specs=in_specs,
        out_specs=out_specs,
        compiler_params=pltpu.CompilerParams(
            dimension_semantics=("parallel",),   # shards rows across v7x's 2 TCs
            vmem_limit_bytes=vmem_limit),
        cost_estimate=cost,
    )(*args)

    out2 = out2[:rows, :out_dim].astype(x.dtype)
    return out2.reshape(batch, num_fields, out_dim)


def init_mlp_params(key, input_dim, hidden_sizes):
    """Deterministic init matching torch.nn.Linear default (U(-1/sqrt(in), 1/sqrt(in)))."""
    weights_t, biases = [], []
    d_in = input_dim
    for d_out in hidden_sizes:
        key, kw, kb = jax.random.split(key, 3)
        bound = 1.0 / jnp.sqrt(jnp.float32(d_in))
        # torch stores weight as (out, in); we pass the transposed (in, out) form.
        w_t = jax.random.uniform(kw, (d_in, d_out), jnp.float32, -bound, bound)
        b = jax.random.uniform(kb, (d_out,), jnp.float32, -bound, bound)
        weights_t.append(w_t)
        biases.append(b)
        d_in = d_out
    return weights_t, biases


def mlp_reference_f32(x, weights_t, biases):
    """Pure-f32 JAX reference of the same forward pass."""
    h = x
    for w, b in zip(weights_t, biases):
        h = jnp.maximum(jnp.matmul(h, w) + b, 0.0)
    return h


def mlp_reference_bf16(x, weights_t, biases):
    """Reference mimicking the kernel math: bf16 matmul inputs, f32 accumulate."""
    h = x
    for w, b in zip(weights_t, biases):
        acc = jnp.matmul(h.astype(jnp.bfloat16), w.astype(jnp.bfloat16),
                         preferred_element_type=jnp.float32)
        h = jnp.maximum(acc + b, 0.0)
    return h


def _check(batch, num_fields, embed_dim, hidden_sizes, key, row_tile=256):
    key, kx = jax.random.split(key)
    x = jax.random.normal(kx, (batch, num_fields, embed_dim), jnp.float32)
    weights_t, biases = init_mlp_params(key, embed_dim, hidden_sizes)

    out = jax.block_until_ready(mlp_forward(x, weights_t, biases,
                                            row_tile=row_tile))
    assert out.shape == (batch, num_fields, hidden_sizes[-1])

    ref_bf16 = mlp_reference_bf16(x, weights_t, biases)
    ref_f32 = mlp_reference_f32(x, weights_t, biases)
    assert jnp.allclose(out, ref_bf16, atol=1e-3, rtol=1e-3), \
        "mismatch vs bf16-faithful reference"
    assert jnp.allclose(out, ref_f32, atol=5e-2, rtol=5e-2), \
        "mismatch vs f32 reference"


if __name__ == "__main__":
    # Module config (use_bn=False): input_dim=embed_dim, two hidden layers.
    key = jax.random.PRNGKey(0)

    # Base case (matches module docstring shapes).
    _check(batch=2, num_fields=8, embed_dim=32, hidden_sizes=(64, 32), key=key)

    # Exercise grid > 1 and row padding (rows=15 -> padded to a tile multiple).
    key2 = jax.random.PRNGKey(1)
    _check(batch=3, num_fields=5, embed_dim=32, hidden_sizes=(64, 32),
           key=key2, row_tile=8)

    print("KERNEL_OK")
</pallas_src>

<mosaic_0001>
module attributes {stable_mosaic.version = 11 : i64} {
  func.func @_mlp_kernel(%arg0: i32, %arg1: memref<16x128xbf16, #tpu.memory_space<vmem>>, %arg2: memref<128x128xbf16, #tpu.memory_space<vmem>>, %arg3: memref<1x128xf32, #tpu.memory_space<vmem>>, %arg4: memref<128x128xbf16, #tpu.memory_space<vmem>>, %arg5: memref<1x128xf32, #tpu.memory_space<vmem>>, %arg6: memref<16x128xf32, #tpu.memory_space<vmem>>) attributes {dimension_semantics = [#tpu.dimension_semantics<parallel>], iteration_bounds = array<i64: 1>, scalar_prefetch = 0 : i64, scratch_operands = 0 : i64, tpu.core_type = #tpu.core_type<tc>, window_params = [{transform_indices = @transform_0, window_bounds = array<i64: 16, 128>}, {pipeline_mode = #tpu.pipeline_mode<synchronous>, transform_indices = @transform_1, window_bounds = array<i64: 128, 128>}, {pipeline_mode = #tpu.pipeline_mode<synchronous>, transform_indices = @transform_2, window_bounds = array<i64: 1, 128>}, {pipeline_mode = #tpu.pipeline_mode<synchronous>, transform_indices = @transform_3, window_bounds = array<i64: 128, 128>}, {pipeline_mode = #tpu.pipeline_mode<synchronous>, transform_indices = @transform_4, window_bounds = array<i64: 1, 128>}, {transform_indices = @transform_5, window_bounds = array<i64: 16, 128>}]} {
    %c0 = arith.constant 0 : index
    %c0_0 = arith.constant 0 : index
    %0 = vector.load %arg1[%c0, %c0_0] : memref<16x128xbf16, #tpu.memory_space<vmem>>, vector<16x128xbf16>
    %c0_1 = arith.constant 0 : index
    %c0_2 = arith.constant 0 : index
    %1 = vector.load %arg2[%c0_1, %c0_2] : memref<128x128xbf16, #tpu.memory_space<vmem>>, vector<128x128xbf16>
    %c0_3 = arith.constant 0 : index
    %c0_4 = arith.constant 0 : index
    %2 = vector.load %arg3[%c0_3, %c0_4] : memref<1x128xf32, #tpu.memory_space<vmem>>, vector<1x128xf32>
    %cst = arith.constant dense<0.000000e+00> : vector<16x128xf32>
    %3 = tpu.matmul %0, %1, %cst {dimension_numbers = #tpu.dot_dimension_numbers<[1], [0], [0], [1], [0, 0, 1, 1], [], []>} : vector<16x128xbf16>, vector<128x128xbf16>, vector<16x128xf32> -> vector<16x128xf32>
    %4 = vector.broadcast %2 : vector<1x128xf32> to vector<16x128xf32>
    %5 = arith.addf %3, %4 : vector<16x128xf32>
    %cst_5 = arith.constant 0.000000e+00 : f32
    %6 = vector.broadcast %cst_5 : f32 to vector<16x128xf32>
    %7 = arith.maximumf %5, %6 : vector<16x128xf32>
    %8 = arith.truncf %7 : vector<16x128xf32> to vector<16x128xbf16>
    %c0_6 = arith.constant 0 : index
    %c0_7 = arith.constant 0 : index
    %9 = vector.load %arg4[%c0_6, %c0_7] : memref<128x128xbf16, #tpu.memory_space<vmem>>, vector<128x128xbf16>
    %c0_8 = arith.constant 0 : index
    %c0_9 = arith.constant 0 : index
    %10 = vector.load %arg5[%c0_8, %c0_9] : memref<1x128xf32, #tpu.memory_space<vmem>>, vector<1x128xf32>
    %cst_10 = arith.constant dense<0.000000e+00> : vector<16x128xf32>
    %11 = tpu.matmul %8, %9, %cst_10 {dimension_numbers = #tpu.dot_dimension_numbers<[1], [0], [0], [1], [0, 0, 1, 1], [], []>} : vector<16x128xbf16>, vector<128x128xbf16>, vector<16x128xf32> -> vector<16x128xf32>
    %12 = vector.broadcast %10 : vector<1x128xf32> to vector<16x128xf32>
    %13 = arith.addf %11, %12 : vector<16x128xf32>
    %cst_11 = arith.constant 0.000000e+00 : f32
    %14 = vector.broadcast %cst_11 : f32 to vector<16x128xf32>
    %15 = arith.maximumf %13, %14 : vector<16x128xf32>
    %c0_12 = arith.constant 0 : index
    %c0_13 = arith.constant 0 : index
    %16 = vector.load %arg6[%c0_12, %c0_13] : memref<16x128xf32, #tpu.memory_space<vmem>>, vector<16x128xf32>
    tpu.vector_store %arg6[%c0_12, %c0_13], %15 {strides = array<i32>} : memref<16x128xf32, #tpu.memory_space<vmem>>, vector<16x128xf32>,
    return
  }
  func.func @transform_0(%arg0: i32) -> (i32, i32) {
    %c0_i32 = arith.constant 0 : i32
    %c0_i32_0 = arith.constant 0 : i32
    return %arg0, %c0_i32 : i32, i32
  }
  func.func @transform_1(%arg0: i32) -> (i32, i32) {
    %c0_i32 = arith.constant 0 : i32
    %c0_i32_0 = arith.constant 0 : i32
    %c0_i32_1 = arith.constant 0 : i32
    return %c0_i32, %c0_i32_0 : i32, i32
  }
  func.func @transform_2(%arg0: i32) -> (i32, i32) {
    %c0_i32 = arith.constant 0 : i32
    %c0_i32_0 = arith.constant 0 : i32
    %c0_i32_1 = arith.constant 0 : i32
    return %c0_i32, %c0_i32_0 : i32, i32
  }
  func.func @transform_3(%arg0: i32) -> (i32, i32) {
    %c0_i32 = arith.constant 0 : i32
    %c0_i32_0 = arith.constant 0 : i32
    %c0_i32_1 = arith.constant 0 : i32
    return %c0_i32, %c0_i32_0 : i32, i32
  }
  func.func @transform_4(%arg0: i32) -> (i32, i32) {
    %c0_i32 = arith.constant 0 : i32
    %c0_i32_0 = arith.constant 0 : i32
    %c0_i32_1 = arith.constant 0 : i32
    return %c0_i32, %c0_i32_0 : i32, i32
  }
  func.func @transform_5(%arg0: i32) -> (i32, i32) {
    %c0_i32 = arith.constant 0 : i32
    %c0_i32_0 = arith.constant 0 : i32
    return %arg0, %c0_i32 : i32, i32
  }
}

</mosaic_0001>

<bundles_post_ra>
// kernel: tpu_custom_call.1
= control target key start
LH: loop header
LB: loop body
LE: loop exit
PB: predicated region body
PF: predicated region fallthrough
CT: control target
= control target key end

     0   :  { %10 = vsyncpa [#allocation3], 0  ;;  %s568_s0 = inlined_call_operand.hbm [shape: bf16[16,128], index: 0, kind: input, shape index: {}]   ;;  %s569_s1 = inlined_call_operand.hbm [shape: bf16[128,128], index: 1, kind: input, shape index: {}]   ;;  %s570_s2 = inlined_call_operand.vmem [shape: f32[1,128], index: 2, kind: input, shape index: {}]   ;;  %s571_s3 = inlined_call_operand.hbm [shape: bf16[128,128], index: 3, kind: input, shape index: {}]   ;;  %s572_s4 = inlined_call_operand.vmem [shape: f32[1,128], index: 4, kind: input, shape index: {}]   ;;  %s573_s5 = inlined_call_operand.hbm [shape: f32[16,128], index: 5, kind: output, shape index: {}]  }
   0x1   :  { %11 = vsyncpa [#allocation6], 0 }
   0x2   :  { %12 = vsyncpa [#allocation4], 0  ;;  %s510_s18 = smov [#allocation5]   ;;  %s511_s20 = smov [#allocation2]  }
   0x3   :  { %s30_s19 = sshll.u32 %s510_s18, 4  ;;  %s18_s21 = sshll.u32 %s511_s20, 4  ;;  %s31_s19 = int_to_ptr.vmem [resolvable:$true] %s30_s19  ;;  %s19_s21 = int_to_ptr.vmem [resolvable:$true] %s18_s21 }
   0x4   :  { %s432_s22 = scalar_lea.vmem %s31_s19, 1024  ;;  %p437_p1 = scmp.lt.s32.totalorder %s31_s19, %s31_s19 }
   0x5   :  { %p433_p0 = scmp.ne.s32.totalorder %s31_s19, %s432_s22  ;;  %p438_p2 = scmp.lt.s32.totalorder %s432_s22, %s432_s22 }
   0x7   :  { %p439_p3 = por %p438_p2, %p437_p1 }
   0x9   :  { %p440_p4 = pnand %p439_p3, %p433_p0 }
   0xb   :  { %443 = shalt.err (!%p440_p4)
}
   0xc   :  { %s512_s23 = smov 64   ;;  %s513_s24 = smov 4  }
   0xd   :  { %36 = dma.hbm_to_vmem [thread:$0]  %s569_s1, 1024, %s31_s19, [#allocation6], %s512_s23, %s512_s23, %s513_s24  }
   0xe   :  { %s452_s27 = scalar_lea.vmem %s19_s21, 128  ;;  %p457_p6 = scmp.lt.s32.totalorder %s19_s21, %s19_s21 }
   0xf   :  { %p453_p5 = scmp.ne.s32.totalorder %s19_s21, %s452_s27  ;;  %p458_p7 = scmp.lt.s32.totalorder %s452_s27, %s452_s27 }
  0x11   :  { %p459_p8 = por %p458_p7, %p457_p6 }
  0x13   :  { %p460_p9 = pnand %p459_p8, %p453_p5 }
  0x15   :  { %463 = shalt.err (!%p460_p9)
}
  0x16   :  { %24 = dma.hbm_to_vmem [thread:$0]  %s568_s0, 128, %s19_s21, [#allocation3], %s512_s23, %s512_s23, %s513_s24  }
  0x17   :  { %s514_s30 = smov [#allocation7]  }
  0x18   :  { %s44_s6 = sshll.u32 %s514_s30, 4  ;;  %s45_s6 = int_to_ptr.vmem [resolvable:$true] %s44_s6 }
  0x19   :  { %s472_s7 = scalar_lea.vmem %s45_s6, 1024  ;;  %p477_p11 = scmp.lt.s32.totalorder %s45_s6, %s45_s6 }
  0x1a   :  { %p473_p10 = scmp.ne.s32.totalorder %s45_s6, %s472_s7  ;;  %p478_p12 = scmp.lt.s32.totalorder %s472_s7, %s472_s7 }
  0x1c   :  { %p479_p13 = por %p478_p12, %p477_p11 }
  0x1e   :  { %p480_p0 = pnand %p479_p13, %p473_p10 }
  0x20   :  { %483 = shalt.err (!%p480_p0)
}
  0x21   :  { %50 = dma.hbm_to_vmem [thread:$0]  %s571_s3, 1024, %s45_s6, [#allocation6], %s512_s23, %s512_s23, %s513_s24  }
  0x22   :  { %504 = dma.done.wait [#allocation3], 128  }
  0x23   :  { %505 = vsyncadd [#allocation3], 4294967168 }
  0x24   :  { %506 = dma.done.wait [#allocation6], 2048  }
  0x25   :  { %507 = vsyncadd [#allocation6], 4294965248  ;;  %v515_v0 = vmov 0.0   ;;  %vm516_vm0 = vmmov 0   ;;  %v407_v1 = vld [vmem:[#allocation5 + $0x38] sm:$0xff]   ;;  %v408_v2 = vld [vmem:[#allocation5 + $0x30] sm:$0xff]  }
  0x26   :  { %357 = vmatprep.subr.bf16.mxu0 %v515_v0  ;;  %373 = vmatprep.mubr.msk.bf16.mxu0 %vm516_vm0, %v515_v0  ;;  %v409_v3 = vld [vmem:[#allocation5 + $0x28] sm:$0xff]   ;;  %v416_v4 = vld [vmem:[#allocation7 + $0x38] sm:$0xff]   ;;  %v410_v5 = vld [vmem:[#allocation5 + $0x20] sm:$0xff]   ;;  %s517_s11 = smov [#allocation8]  }
  0x27   :  { %377 = vmatprep.subr.bf16.mxu1 %v515_v0  ;;  %393 = vmatprep.mubr.msk.bf16.mxu1 %vm516_vm0, %v515_v0  ;;  %v417_v6 = vld [vmem:[#allocation7 + $0x30] sm:$0xff]   ;;  %v411_v7 = vld [vmem:[#allocation5 + $0x18] sm:$0xff]   ;;  %v418_v8 = vld [vmem:[#allocation7 + $0x28] sm:$0xff]  }
  0x28   :  { %358 = vmatpush3.bf16.msra.mxu0 %v407_v1  ;;  %378 = vmatpush3.bf16.msra.mxu1 %v416_v4  ;;  %v412_v9 = vld [vmem:[#allocation5 + $0x10] sm:$0xff]   ;;  %v419_v10 = vld [vmem:[#allocation7 + $0x20] sm:$0xff]   ;;  %v413_v11 = vld [vmem:[#allocation5 + $0x8] sm:$0xff]  }
  0x29   :  { %359 = vmatprep.subr.bf16.mxu0 %v515_v0  ;;  %379 = vmatprep.subr.bf16.mxu1 %v515_v0  ;;  %v420_v12 = vld [vmem:[#allocation7 + $0x18] sm:$0xff]   ;;  %v414_v13 = vld [vmem:[#allocation5] sm:$0xff]   ;;  %v421_v15 = vld [vmem:[#allocation7 + $0x10] sm:$0xff]  }
  0x2a   :  { %v415_v14 = vld [vmem:[#allocation2] sm:$0xff]   ;;  %v422_v16 = vld [vmem:[#allocation7 + $0x8] sm:$0xff]   ;;  %v423_v17 = vld [vmem:[#allocation7] sm:$0xff]  }
  0x2b   :  { %v320_v18 = vld [vmem:[%s570_s2] ss:$0 sm:$0xff]  ;;  %s307_s2 = sshll.u32 %s517_s11, 4  ;;  %s308_s2 = int_to_ptr.vmem [resolvable:$true] %s307_s2 }
  0x2c   :  { %360 = vmatpush3.bf16.msra.mxu0 %v408_v2  ;;  %380 = vmatpush3.bf16.msra.mxu1 %v417_v6  ;;  %v330_v28 = vld [vmem:[%s572_s4] ss:$0 sm:$0xff]  ;;  %s484_s12 = scalar_lea.vmem %s308_s2, 256  ;;  %p489_p2 = scmp.lt.s32.totalorder %s308_s2, %s308_s2 }
  0x2d   :  { %361 = vmatprep.subr.bf16.mxu0 %v515_v0  ;;  %381 = vmatprep.subr.bf16.mxu1 %v515_v0  ;;  %p485_p1 = scmp.ne.s32.totalorder %s308_s2, %s484_s12  ;;  %p490_p3 = scmp.lt.s32.totalorder %s484_s12, %s484_s12 }
  0x2f   :  { %p491_p4 = por %p490_p3, %p489_p2 }
  0x30   :  { %362 = vmatpush3.bf16.msra.mxu0 %v409_v3  ;;  %382 = vmatpush3.bf16.msra.mxu1 %v418_v8 }
  0x31   :  { %363 = vmatprep.subr.bf16.mxu0 %v515_v0  ;;  %383 = vmatprep.subr.bf16.mxu1 %v515_v0  ;;  %p492_p5 = pnand %p491_p4, %p485_p1 }
  0x34   :  { %364 = vmatpush3.bf16.msra.mxu0 %v410_v5  ;;  %384 = vmatpush3.bf16.msra.mxu1 %v419_v10 }
  0x35   :  { %365 = vmatprep.subr.bf16.mxu0 %v515_v0  ;;  %385 = vmatprep.subr.bf16.mxu1 %v515_v0 }
  0x38   :  { %366 = vmatpush3.bf16.msra.mxu0 %v411_v7  ;;  %386 = vmatpush3.bf16.msra.mxu1 %v420_v12 }
  0x39   :  { %367 = vmatprep.subr.bf16.mxu0 %v515_v0  ;;  %387 = vmatprep.subr.bf16.mxu1 %v515_v0 }
  0x3c   :  { %368 = vmatpush3.bf16.msra.mxu0 %v412_v9  ;;  %388 = vmatpush3.bf16.msra.mxu1 %v421_v15 }
  0x3d   :  { %369 = vmatprep.subr.bf16.mxu0 %v515_v0  ;;  %389 = vmatprep.subr.bf16.mxu1 %v515_v0 }
  0x40   :  { %370 = vmatpush3.bf16.msra.mxu0 %v413_v11  ;;  %390 = vmatpush3.bf16.msra.mxu1 %v422_v16 }
  0x41   :  { %371 = vmatprep.subr.bf16.mxu0 %v515_v0  ;;  %391 = vmatprep.subr.bf16.mxu1 %v515_v0 }
  0x44   :  { %372 = vmatpush3.bf16.msra.mxu0 %v414_v13  ;;  %392 = vmatpush3.bf16.msra.mxu1 %v423_v17 }
  0x47   :  { %374 = vmatmul.mubr.bf16.vlgmr.msra.gmra.mxu0 %v415_v14 }
 0x107   :  { %v176_v19 = vpop.f32.mrf.mxu0 }
 0x108   :  { %v177_v21 = vadd.f32 %v320_v18, %v176_v19 }
 0x109   :  { %v375_v20 = vpop.f32.mrf.mxu0 }
 0x10a   :  { %v183_v25 = vmax.f32 %v177_v21, 0.0 }
 0x10b   :  { %v179_v22 = vpop.f32.mrf.mxu0 }
 0x10c   :  { %v180_v23 = vadd.f32 %v320_v18, %v179_v22 }
 0x10d   :  { %v376_v24 = vpop.f32.mrf.mxu0 }
 0x10e   :  { %v184_v26 = vmax.f32 %v180_v23, 0.0 }
 0x110   :  { %v185_v27 = vpack.c.bf16 %v184_v26, %v183_v25 }
 0x112   :  { %394 = vmatmul.mubr.bf16.vlgmr.msra.gmra.mxu1 %v185_v27 }
 0x1d2   :  { %v291_v29 = vpop.f32.mrf.mxu1 }
 0x1d3   :  { %v292_v30 = vadd.f32 %v330_v28, %v291_v29 }
 0x1d4   :  { %v395_v31 = vpop.f32.mrf.mxu1 }
 0x1d5   :  { %v298_v32 = vmax.f32 %v292_v30, 0.0 }
 0x1d6   :  { %v294_v33 = vpop.f32.mrf.mxu1 }
 0x1d7   :  { %300 = vst [vmem:[#allocation8] sm:$0xff] %v298_v32  ;;  %v295_v34 = vadd.f32 %v330_v28, %v294_v33 }
 0x1d8   :  { %v396_v35 = vpop.f32.mrf.mxu1 }
 0x1d9   :  { %v299_v36 = vmax.f32 %v295_v34, 0.0 }
 0x1db   :  { %301 = vst [vmem:[#allocation8 + $0x8] sm:$0xff] %v299_v36 }
 0x1dc   :  { %495 = shalt.err (!%p492_p5)
}
 0x1dd   :  { %s518_s4 = smov 128   ;;  %s519_s13 = smov 8  }
 0x1de   :  { %313 = dma.vmem_to_hbm [thread:$0]  %s308_s2, 256, %s573_s5, [#allocation4], %s518_s4, %s518_s4, %s519_s13  }
 0x1df   :  { %508 = dma.done.wait [#allocation4], 256  }
 0x1e0   :  { %509 = vsyncadd [#allocation4], 4294967040 }
 0x1e1   :  { %317 = vsyncpa [#allocation3], 1 }
 0x1e2   :  { %318 = vsyncpa [#allocation6], 1 }
 0x1e3   :  { %319 = vsyncpa [#allocation4], 1 }

</bundles_post_ra>
